<compile_context>
chip_gen: v5e
topology: v5e:2x2
jax: 0.10.0
libtpu: 0.0.40
codegen_flags: <defaults>
</compile_context>

<pallas_src>
import jax
import jax.numpy as jnp
from jax import lax
from jax.experimental import pallas as pl
from jax.experimental.pallas import tpu as pltpu


def _round_up(x, m):
    return ((x + m - 1) // m) * m


def _sublane_multiple(dtype):
    # Minimal sublane granularity for the second-to-last block dim per dtype packing.
    return {4: 8, 2: 16, 1: 32}.get(jnp.dtype(dtype).itemsize, 8)


def _make_kernel(*, tk, k_rem, use_acc_scratch):
    """Build the per-tile kernel.

    x_ref: (tm, tk), w_ref: (tk, tn)  [weight already in (K, N) = W.T layout],
    b_ref: (1, tn),  o_ref: (tm, tn), acc_ref (only if use_acc_scratch): f32 (tm, tn).
    """

    def _operands(x_ref, w_ref):
        x = x_ref[...]
        w = w_ref[...]
        if k_rem:  # static: K does not divide by tk -> mask the K tail of the last block
            k = pl.program_id(2)
            nk = pl.num_programs(2)
            limit = jnp.where(k == nk - 1, k_rem, tk)
            x_col = lax.broadcasted_iota(jnp.int32, x.shape, 1)
            w_row = lax.broadcasted_iota(jnp.int32, w.shape, 0)
            x = jnp.where(x_col < limit, x, jnp.zeros_like(x))
            w = jnp.where(w_row < limit, w, jnp.zeros_like(w))
        return x, w

    def kernel_f32_out(x_ref, w_ref, b_ref, o_ref):
        # f32 output: accumulate directly into the resident output block (no scratch).
        @pl.when(pl.program_id(2) == 0)
        def _():
            o_ref[...] = jnp.broadcast_to(b_ref[...], o_ref.shape).astype(o_ref.dtype)

        x, w = _operands(x_ref, w_ref)
        o_ref[...] += jnp.dot(x, w, preferred_element_type=jnp.float32)

    def kernel_acc(x_ref, w_ref, b_ref, o_ref, acc_ref):
        # Low-precision output: f32 VMEM accumulator, single cast+store at the end.
        k = pl.program_id(2)

        @pl.when(k == 0)
        def _():
            acc_ref[...] = jnp.zeros_like(acc_ref)

        x, w = _operands(x_ref, w_ref)
        acc_ref[...] += jnp.dot(x, w, preferred_element_type=jnp.float32)

        @pl.when(k == pl.num_programs(2) - 1)
        def _():
            o_ref[...] = (acc_ref[...] + b_ref[...].astype(jnp.float32)).astype(o_ref.dtype)

    return kernel_acc if use_acc_scratch else kernel_f32_out


def linear_pallas(x, weight_t, bias, *, tm=512, tn=256, tk=512):
    """Compute x @ weight_t + bias.

    x:        (..., K)  activations
    weight_t: (K, N)    weight cached in transposed (W.T) layout at init (not per call)
    bias:     (N,)
    """
    *lead, K = x.shape
    Kw, N = weight_t.shape
    assert Kw == K and bias.shape == (N,)
    M = 1
    for d in lead:
        M *= d

    x2d = x.reshape(M, K)
    b2d = bias.reshape(1, N)
    out_dtype = x.dtype

    # Clamp tiles to the problem size while keeping lane/sublane alignment.
    sub = _sublane_multiple(out_dtype)
    tm = max(sub, min(tm, _round_up(M, sub)))
    tn = max(128, min(tn, _round_up(N, 128)))
    tk = max(128, min(tk, _round_up(K, 128)))

    # v7x has 2 TensorCores: for tiny calls make sure >= 2 parallel output tiles exist.
    if pl.cdiv(M, tm) * pl.cdiv(N, tn) < 2:
        if M > sub:
            tm = _round_up(pl.cdiv(M, 2), sub)
        elif N > 128:
            tn = _round_up(pl.cdiv(N, 2), 128)

    grid = (pl.cdiv(M, tm), pl.cdiv(N, tn), pl.cdiv(K, tk))

    use_acc = jnp.dtype(out_dtype) != jnp.dtype(jnp.float32)
    kernel = _make_kernel(tk=tk, k_rem=K % tk, use_acc_scratch=use_acc)
    scratch_shapes = [pltpu.VMEM((tm, tn), jnp.float32)] if use_acc else []

    # Explicit scoped-VMEM budget (v5e default is 16 MiB; v7x physical is 64 MiB).
    xb = jnp.dtype(x.dtype).itemsize
    wb = jnp.dtype(weight_t.dtype).itemsize
    bb = jnp.dtype(bias.dtype).itemsize
    ob = jnp.dtype(out_dtype).itemsize
    footprint = 2 * (tm * tk * xb + tk * tn * wb + tn * bb + tm * tn * ob)
    if use_acc:
        footprint += tm * tn * 4
    vmem_limit = max(32 << 20, min(int(footprint * 1.25) + (4 << 20), 48 << 20))

    out2d = pl.pallas_call(
        kernel,
        out_shape=jax.ShapeDtypeStruct((M, N), out_dtype),
        grid=grid,
        in_specs=[
            pl.BlockSpec((tm, tk), lambda i, j, k: (i, k)),   # x tile
            pl.BlockSpec((tk, tn), lambda i, j, k: (k, j)),   # W.T tile, (K, N) layout
            pl.BlockSpec((1, tn), lambda i, j, k: (0, j)),    # bias tile
        ],
        out_specs=pl.BlockSpec((tm, tn), lambda i, j, k: (i, j)),
        scratch_shapes=scratch_shapes,
        compiler_params=pltpu.CompilerParams(
            dimension_semantics=("parallel", "parallel", "arbitrary"),
            vmem_limit_bytes=vmem_limit,
        ),
    )(x2d, weight_t, b2d)

    return out2d.reshape(*lead, N)


def init_params(key, in_features, out_features, dtype=jnp.float32):
    """Match nn.init.kaiming_normal_ (fan_in, gain=sqrt(2)) + zero bias.

    The weight is transposed to (in_features, out_features) ONCE here so the
    kernel's hot path never transposes the RHS.
    """
    std = (2.0 / in_features) ** 0.5
    w = std * jax.random.normal(key, (out_features, in_features), jnp.float32)
    weight_t = jnp.asarray(w.T, dtype=dtype)      # one-time layout change at init
    bias = jnp.zeros((out_features,), dtype)
    return weight_t, bias


if __name__ == "__main__":
    # TODO(synk): the dropout branch is a no-op here since the module default p=0.0
    # never instantiates nn.Dropout; nonzero-p training-mode dropout is omitted.
    key = jax.random.PRNGKey(0)
    k1, k2, k3, k4, k5, k6 = jax.random.split(key, 6)

    linear_jit = jax.jit(linear_pallas, static_argnames=("tm", "tn", "tk"))

    # Case 1: tile-aligned shapes (f32, output-resident accumulation, no scratch).
    batch, seq, in_f, out_f = 2, 8, 128, 128
    x = jax.random.normal(k1, (batch, seq, in_f), jnp.float32)
    w_t, b = init_params(k2, in_f, out_f)
    out = linear_jit(x, w_t, b)
    jax.block_until_ready(out)
    ref = x @ w_t + b
    assert out.shape == (batch, seq, out_f)
    assert jnp.allclose(out, ref, atol=1e-4, rtol=1e-4)

    # Case 2: unaligned shapes (masked M/N boundary blocks + in-kernel K-tail mask).
    batch, seq, in_f, out_f = 2, 7, 100, 75
    x = jax.random.normal(k3, (batch, seq, in_f), jnp.float32)
    w_t, b = init_params(k4, in_f, out_f)
    out = linear_jit(x, w_t, b)
    jax.block_until_ready(out)
    ref = x @ w_t + b
    assert out.shape == (batch, seq, out_f)
    assert jnp.allclose(out, ref, atol=1e-4, rtol=1e-4)

    # Case 3: bf16 inputs (bf16 MXU path, f32 scratch accumulator, multi-step K + tail).
    batch, seq, in_f, out_f = 2, 8, 640, 200
    x = jax.random.normal(k5, (batch, seq, in_f), jnp.float32).astype(jnp.bfloat16)
    w_t, b = init_params(k6, in_f, out_f, dtype=jnp.bfloat16)
    out = linear_jit(x, w_t, b)
    jax.block_until_ready(out)
    ref = x.astype(jnp.float32) @ w_t.astype(jnp.float32) + b.astype(jnp.float32)
    assert out.shape == (batch, seq, out_f)
    assert out.dtype == jnp.bfloat16
    assert jnp.allclose(out.astype(jnp.float32), ref, atol=1e-1, rtol=1e-1)

    print("KERNEL_OK")
</pallas_src>

<mosaic_0001>
module attributes {stable_mosaic.version = 11 : i64} {
  func.func @kernel_f32_out(%arg0: i32, %arg1: i32, %arg2: i32, %arg3: memref<8x128xf32, #tpu.memory_space<vmem>>, %arg4: memref<128x128xf32, #tpu.memory_space<vmem>>, %arg5: memref<1x128xf32, #tpu.memory_space<vmem>>, %arg6: memref<8x128xf32, #tpu.memory_space<vmem>>) attributes {dimension_semantics = [#tpu.dimension_semantics<parallel>, #tpu.dimension_semantics<parallel>, #tpu.dimension_semantics<arbitrary>], iteration_bounds = array<i64: 2, 1, 1>, scalar_prefetch = 0 : i64, scratch_operands = 0 : i64, tpu.core_type = #tpu.core_type<tc>, window_params = [{transform_indices = @transform_0, window_bounds = array<i64: 8, 128>}, {transform_indices = @transform_1, window_bounds = array<i64: 128, 128>}, {transform_indices = @transform_2, window_bounds = array<i64: 1, 128>}, {transform_indices = @transform_3, window_bounds = array<i64: 8, 128>}]} {
    %c0_i32 = arith.constant 0 : i32
    %0 = arith.cmpi eq, %arg2, %c0_i32 : i32
    %1 = arith.extui %0 : i1 to i32
    %c0_i32_0 = arith.constant 0 : i32
    %2 = arith.cmpi ne, %1, %c0_i32_0 : i32
    scf.if %2 {
      %c0_8 = arith.constant 0 : index
      %c0_9 = arith.constant 0 : index
      %9 = vector.load %arg5[%c0_8, %c0_9] : memref<1x128xf32, #tpu.memory_space<vmem>>, vector<1x128xf32>
      %10 = vector.shape_cast %9 : vector<1x128xf32> to vector<1x128xf32>
      %11 = vector.broadcast %10 : vector<1x128xf32> to vector<8x128xf32>
      %c0_10 = arith.constant 0 : index
      %c0_11 = arith.constant 0 : index
      %12 = vector.load %arg6[%c0_10, %c0_11] : memref<8x128xf32, #tpu.memory_space<vmem>>, vector<8x128xf32>
      tpu.vector_store %arg6[%c0_10, %c0_11], %11 {strides = array<i32>} : memref<8x128xf32, #tpu.memory_space<vmem>>, vector<8x128xf32>,
    } else {
    }
    %c0 = arith.constant 0 : index
    %c0_1 = arith.constant 0 : index
    %3 = vector.load %arg3[%c0, %c0_1] : memref<8x128xf32, #tpu.memory_space<vmem>>, vector<8x128xf32>
    %c0_2 = arith.constant 0 : index
    %c0_3 = arith.constant 0 : index
    %4 = vector.load %arg4[%c0_2, %c0_3] : memref<128x128xf32, #tpu.memory_space<vmem>>, vector<128x128xf32>
    %c0_4 = arith.constant 0 : index
    %c0_5 = arith.constant 0 : index
    %5 = vector.load %arg6[%c0_4, %c0_5] : memref<8x128xf32, #tpu.memory_space<vmem>>, vector<8x128xf32>
    %cst = arith.constant dense<0.000000e+00> : vector<8x128xf32>
    %6 = tpu.matmul %3, %4, %cst {dimension_numbers = #tpu.dot_dimension_numbers<[1], [0], [0], [1], [0, 0, 1, 1], [], []>} : vector<8x128xf32>, vector<128x128xf32>, vector<8x128xf32> -> vector<8x128xf32>
    %7 = arith.addf %5, %6 : vector<8x128xf32>
    %c0_6 = arith.constant 0 : index
    %c0_7 = arith.constant 0 : index
    %8 = vector.load %arg6[%c0_6, %c0_7] : memref<8x128xf32, #tpu.memory_space<vmem>>, vector<8x128xf32>
    tpu.vector_store %arg6[%c0_6, %c0_7], %7 {strides = array<i32>} : memref<8x128xf32, #tpu.memory_space<vmem>>, vector<8x128xf32>,
    return
  }
  func.func @transform_0(%arg0: i32, %arg1: i32, %arg2: i32) -> (i32, i32) {
    %c0_i32 = arith.constant 0 : i32
    return %arg0, %arg2 : i32, i32
  }
  func.func @transform_1(%arg0: i32, %arg1: i32, %arg2: i32) -> (i32, i32) {
    %c0_i32 = arith.constant 0 : i32
    return %arg2, %arg1 : i32, i32
  }
  func.func @transform_2(%arg0: i32, %arg1: i32, %arg2: i32) -> (i32, i32) {
    %c0_i32 = arith.constant 0 : i32
    %c0_i32_0 = arith.constant 0 : i32
    return %c0_i32, %arg1 : i32, i32
  }
  func.func @transform_3(%arg0: i32, %arg1: i32, %arg2: i32) -> (i32, i32) {
    %c0_i32 = arith.constant 0 : i32
    return %arg0, %arg1 : i32, i32
  }
}

</mosaic_0001>

<bundles_post_ra>
// kernel: linear_pallas.1
= control target key start
LH: loop header
LB: loop body
LE: loop exit
PB: predicated region body
PF: predicated region fallthrough
CT: control target
= control target key end

     0   :  { %8 = vsyncpa [#allocation3], 0  ;;  %s846_s0 = inlined_call_operand.hbm [shape: f32[16,128], index: 0, kind: input, shape index: {}]   ;;  %s847_s1 = inlined_call_operand.hbm [shape: f32[128,128], index: 1, kind: input, shape index: {}]   ;;  %s848_s2 = inlined_call_operand.vmem [shape: f32[1,128], index: 2, kind: input, shape index: {}]   ;;  %s849_s3 = inlined_call_operand.hbm [shape: f32[16,128], index: 3, kind: output, shape index: {}]  }
   0x1   :  { %10 = vsyncpa [#allocation3 + $0x1], 0 }
   0x2   :  { %11 = vsyncpa [#allocation6], 0 }
   0x3   :  { %12 = vsyncpa [#allocation4], 0 }
   0x4   :  { %14 = vsyncpa [#allocation4 + $0x1], 0  ;;  %s693_s12 = smov 0   ;;  %s695_s13 = smov 0  }
   0x5   :  { %s697_s14 = smov 0   ;;  %s699_s15 = smov 0  }
   0x6   :  { %s701_s16 = smov 0   ;;  %s703_s17 = smov 0  }
   0x7 LB: > { %s430_s18 = sadd.s32 4294967295, %s668_s17   ;;  %p432_p0 = scmp.ge.s32.totalorder %s668_s17, 1  ;;  %s668_s17 = sphi %s703_s17, %s20_s17   ;;  %s664_s16 = sphi %s701_s16, %s860_s16   ;;  %s660_s15 = sphi %s699_s15, %s859_s15   ;;  %s656_s14 = sphi %s697_s14, %s858_s14   ;;  %s652_s13 = sphi %s695_s13, %s857_s13   ;;  %s648_s12 = sphi %s693_s12, %s856_s12  }
   0x8   : > { %p725_p1 = scmp.eq.s32.totalorder %s430_s18, 0  ;;  %p154_p2 = scmp.lt.s32.totalorder %s668_s17, 3 }
   0x9   : > { %s169_s22 = sshll.u32 %s847_s1, 4  ;;  %s670_s24 = smov [#allocation5]   ;;  %s170_s22 = int_to_ptr.hbm [resolvable:$true] %s169_s22 }
   0xa   : > { %p733_p3 = pnand %p432_p0, %p154_p2  ;;  %s171_s25 = sshll.u32 %s670_s24, 4  ;;  %s172_s25 = int_to_ptr.vmem [resolvable:$true] %s171_s25 }
   0xb   : > { %p435_p6 = scmp.ge.s32.totalorder %s668_s17, 2  ;;  %s671_s26 = smov 128  }
   0xc   : > { %p454_p4 = pneg %p733_p3  ;;  %s672_s27 = smov 8  }
   0xd   : > { %s431_s28 = sadd.s32 4294967294, %s668_s17   ;;  %s39_s29 = sadd.s32 1, %s664_s16 }
   0xe   : > { %p455_p5 = pnand %p454_p4, %p725_p1  ;;  %s48_s30 = sadd.s32 1, %s656_s14 }
   0xf   : > { %p41_p7 = scmp.ge.s32.totalorder %s39_s29, 2  ;;  %p55_p8 = scmp.ne.s32.totalorder %s656_s14, %s652_s13 }
  0x10   : > { %457 = dma.hbm_to_vmem [thread:$0]  (!%p455_p5), %s170_s22, 2048, %s172_s25, [#allocation6], %s671_s26, %s671_s26, %s672_s27  }
  0x11   : > { %p56_p9 = scmp.eq.s32.totalorder %s668_s17, 0  ;;  %p61_p10 = scmp.ne.s32.totalorder %s652_s13, %s648_s12 }
  0x12   : > { %s862_s29 = smov (%p41_p7, %s39_s29), 0  ;;  %p141_p13 = scmp.eq.s32.totalorder %s430_s18, 1 }
  0x13   : > { %p752_p11 = por %p56_p9, %p55_p8  ;;  %p758_p12 = por %p725_p1, %p61_p10 }
  0x14   : > { %s43_s6 = ssub.s32 %s664_s16, %s862_s29  ;;  %p147_p2 = scmp.eq.s32.totalorder %s431_s28, 1 }
  0x15   : > { %p46_p0 = scmp.eq.s32.totalorder %s43_s6, 0  ;;  %p764_p4 = por %p141_p13, %p55_p8 }
  0x16   : > { %p467_p5 = scmp.lt.s32.totalorder %s668_s17, 2  ;;  %p772_p7 = por %p147_p2, %p61_p10 }
  0x17   : > { %s770_s8 = scalar_select %p46_p0, %s656_s14, %s48_s30  }
  0x18   : > { %s191_s10 = sand.u32 1, %s656_s14   ;;  %s437_s20 = sshll.u32 %s664_s16, 3 }
  0x19   : > { %s436_s11 = sshll.u32 %s191_s10, 3  ;;  %s200_s18 = scalar_lea.hbm %s846_s0, %s437_s20 }
  0x1a   : > { %s195_s24 = scalar_lea.vmem [#allocation2], %s436_s11  ;;  %s202_s26 = sshll.u32 %s200_s18, 4  ;;  %s203_s26 = int_to_ptr.hbm [resolvable:$true] %s202_s26 }
  0x1b   : > { %s204_s25 = sshll.u32 %s195_s24, 4  ;;  %p459_p8 = pnand %p467_p5, %p752_p11  ;;  %s205_s25 = int_to_ptr.vmem [resolvable:$true] %s204_s25 }
  0x1c   : > { %s192_s27 = scalar_lea.sflag [#allocation3], %s191_s10  ;;  %213 = sbr.rel (%p733_p3) target bundleno = 199 (0xc7), region = 32 }
  0x1d   : > { %461 = dma.hbm_to_vmem [thread:$0]  (!%p459_p8), %s203_s26, 128, %s205_s25, %s192_s27  }
  0x1e   : > { %s786_s28 = sand.u32 (!%p733_p3), 1, %s652_s13  }
  0x1f   : > { %s439_s30 = sshll.u32 (!%p733_p3), %s786_s28, 3  ;;  %s216_s6 = scalar_lea.sflag (!%p733_p3), [#allocation3], %s786_s28 }
  0x20   : > { %s792_s11 = scalar_lea.vmem (!%p733_p3), [#allocation2], %s439_s30 }
  0x21   : > { %635 = dma.done.wait (%p758_p12), %s216_s6, 128  }
  0x22   : > { %637 = vsyncadd (%p758_p12), %s216_s6, 4294967168 }
  0x23   : > { %639 = dma.done.wait (%p725_p1), [#allocation6], 2048  }
  0x24   : > { %641 = vsyncadd (%p725_p1), [#allocation6], 4294965248  ;;  %v280_v0 = vld [vmem:[#allocation5 + $0x78] sm:$0xff]  ;;  %v279_v1 = vld [vmem:[#allocation5 + $0x70] sm:$0xff]  ;;  %s443_s19 = sshll.u32 %s660_s15, 3  ;;  %s250_s21 = scalar_lea.vmem [#allocation7], %s439_s30 }
  0x25   : > { %282 = vmatpush.msra.mxu0 %v280_v0  ;;  %v278_v2 = vld [vmem:[#allocation5 + $0x68] sm:$0xff]  ;;  %v277_v3 = vld [vmem:[#allocation5 + $0x60] sm:$0xff]  ;;  %v276_v4 = vld [vmem:[#allocation5 + $0x58] sm:$0xff]  ;;  %s316_s5 = scalar_lea.hbm %s849_s3, %s443_s19  ;;  %s318_s22 = sshll.u32 %s250_s21, 4  ;;  %s319_s22 = int_to_ptr.vmem [resolvable:$true] %s318_s22 }
  0x26   : > { %v275_v5 = vld [vmem:[#allocation5 + $0x50] sm:$0xff]  ;;  %v274_v6 = vld [vmem:[#allocation5 + $0x48] sm:$0xff]  ;;  %v273_v7 = vld [vmem:[#allocation5 + $0x40] sm:$0xff]  ;;  %s320_s18 = sshll.u32 %s316_s5, 4  ;;  %s305_s24 = scalar_lea.sflag [#allocation4], %s786_s28  ;;  %s321_s18 = int_to_ptr.hbm [resolvable:$true] %s320_s18 }
  0x27   : > { %283 = vmatpush.msra.mxu0 %v279_v1  ;;  %v272_v8 = vld [vmem:[#allocation5 + $0x38] sm:$0xff]  ;;  %v271_v9 = vld [vmem:[#allocation5 + $0x30] sm:$0xff]  ;;  %v270_v10 = vld [vmem:[#allocation5 + $0x28] sm:$0xff]  ;;  %s596_s15 = sshra.s32 %s321_s18, 4  ;;  %s602_s6 = scalar_lea.hbm %s849_s3, 16  ;;  %s597_s15 = int_to_ptr.hbm [resolvable:$true] %s596_s15 }
  0x28   : > { %v269_v11 = vld [vmem:[#allocation5 + $0x20] sm:$0xff]  ;;  %v268_v12 = vld [vmem:[#allocation5 + $0x18] sm:$0xff]  ;;  %v267_v13 = vld [vmem:[#allocation5 + $0x10] sm:$0xff]  ;;  %s598_s25 = scalar_lea.hbm %s597_s15, 8  ;;  %p603_p10 = scmp.lt.s32.totalorder %s597_s15, %s849_s3 }
  0x29   : > { %284 = vmatpush.msra.mxu0 %v278_v2  ;;  %v266_v14 = vld [vmem:[#allocation5 + $0x8] sm:$0xff]  ;;  %v265_v15 = vld [vmem:[#allocation5] sm:$0xff]  ;;  %v264_v16 = vld [vmem:[%s792_s11] sm:$0xff]  ;;  %p599_p1 = scmp.ne.s32.totalorder %s597_s15, %s598_s25  ;;  %p604_p11 = scmp.lt.s32.totalorder %s602_s6, %s598_s25 }
  0x2a   : > { %v521_v17 = vld [vmem:[%s848_s2] ss:$0 sm:$0xff] }
  0x2b   : > { %285 = vmatpush.msra.mxu0 %v277_v3  ;;  %p600_p3 = pnand %p599_p1, %p764_p4  ;;  %p605_p12 = por %p604_p11, %p603_p10 }
  0x2d   : > { %286 = vmatpush.msra.mxu0 %v276_v4  ;;  %p601_p9 = pneg %p600_p3 }
  0x2f   : > { %287 = vmatpush.msra.mxu0 %v275_v5  ;;  %p606_p13 = pnand %p605_p12, %p601_p9 }
  0x31   : > { %288 = vmatpush.msra.mxu0 %v274_v6 }
  0x33   : > { %289 = vmatpush.msra.mxu0 %v273_v7 }
  0x35   : > { %290 = vmatpush.msra.mxu0 %v272_v8 }
  0x37   : > { %291 = vmatpush.msra.mxu0 %v271_v9 }
  0x39   : > { %292 = vmatpush.msra.mxu0 %v270_v10 }
  0x3b   : > { %293 = vmatpush.msra.mxu0 %v269_v11 }
  0x3d   : > { %294 = vmatpush.msra.mxu0 %v268_v12 }
  0x3f   : > { %295 = vmatpush.msra.mxu0 %v267_v13 }
  0x41   : > { %296 = vmatpush.msra.mxu0 %v266_v14 }
  0x43   : > { %297 = vmatpush.msra.mxu0 %v265_v15 }
  0x44   : > { %298 = vmatmul.f32.vlgmr.msra.gmra.mxu0 %v264_v16 }
  0xc1   : > { %v299_v18 = vpop.f32.mrf.mxu0 }
  0xc2   : > { %v302_v19 = vadd.f32 %v521_v17, %v299_v18 }
  0xc4   : > { %303 = vst [vmem:[%s250_s21] sm:$0xff] %v302_v19 }
  0xc5   : > { %609 = shalt.err (!%p606_p13)
}
  0xc6   : > { %452 = dma.vmem_to_hbm [thread:$0]  (%p764_p4), %s319_s22, 128, %s321_s18, %s305_s24  }
  0xc7 PF: > { %s332_s28 = sand.u32 1, %s648_s12   ;;  %p463_p0 = pnand %p435_p6, %p772_p7 }
  0xc8   : > { %s333_s19 = scalar_lea.sflag [#allocation4], %s332_s28 }
  0xc9   : > { %p464_p2 = pneg %p463_p0 }
  0xcb   : > { %643 = dma.done.wait (%p464_p2), %s333_s19, 128  }
  0xcc   : > { %645 = vsyncadd (%p464_p2), %s333_s19, 4294967168  ;;  %s20_s17 = sadd.s32 1, %s668_s17   ;;  %s856_s12 = smov %s652_s13 }
  0xcd   : > { %p17_p5 = scmp.ge.s32.totalorder %s20_s17, 4   ;;  %s857_s13 = smov %s656_s14 }
  0xce   : > { %s858_s14 = smov %s770_s8  ;;  %s859_s15 = smov %s664_s16 }
  0xcf   : > { %s860_s16 = smov %s862_s29  ;;  %19 = sbr.rel (!%p17_p5) target bundleno = 7 (0x7), region = 89 }
  0xd4   :  { %339 = vsyncpa [#allocation3], 1 }
  0xd5   :  { %341 = vsyncpa [#allocation3 + $0x1], 1 }
  0xd6   :  { %342 = vsyncpa [#allocation6], 1 }
  0xd7   :  { %343 = vsyncpa [#allocation4], 1 }
  0xd8   :  { %345 = vsyncpa [#allocation4 + $0x1], 1 }

</bundles_post_ra>
